<compile_context>
chip_gen: v5e
topology: v5e:2x2
jax: 0.10.0
libtpu: 0.0.40
codegen_flags: <defaults>
</compile_context>

<pallas_src>
import jax
import jax.numpy as jnp
from jax import lax
from jax.experimental import pallas as pl
from jax.experimental.pallas import tpu as pltpu

BN_EPS = 1e-5
LANE = 128


def _round_up(x, m):
    return (x + m - 1) // m * m


def encoder_kernel(x_ref, w1_ref, b1_ref, w2_ref, b2_ref, out_ref, acc_ref):
    """grid = (batch tiles, n_items tiles).  acc_ref: (tb, H) f32 scratch."""
    kk = pl.program_id(1)

    @pl.when(kk == 0)
    def _init():
        acc_ref[...] = jnp.zeros_like(acc_ref)

    # Partial x @ W1 for this n_items slice (bf16 operands, f32 accumulation on MXU).
    acc_ref[...] += jnp.dot(x_ref[...], w1_ref[...],
                            preferred_element_type=jnp.float32)

    @pl.when(kk == pl.num_programs(1) - 1)
    def _finalize():
        # f32 epilogue: bias + tanh, then second (small, BN-folded) Linear.
        h = jnp.tanh(acc_ref[...] + b1_ref[...])
        out = jnp.dot(h, w2_ref[...],
                      preferred_element_type=jnp.float32) + b2_ref[...]
        out_ref[...] = out.astype(out_ref.dtype)


def encoder_forward(x, prep, *, tb=None, tk=None,
                    vmem_limit_bytes=48 * 1024 * 1024):
    """x: [B, n_items] (binary implicit feedback). prep: dict from prepare_params."""
    B, n_items = x.shape
    w1 = prep["w1"]                    # (n_items, H), bf16
    H = w1.shape[1]
    Kp = prep["w2"].shape[1]           # K padded up to a multiple of 128
    K = prep["k"]

    if tb is None:
        tb = B if B <= 256 else 256                      # MXU-sized batch tiles
    if tk is None:
        tk = min(512, _round_up(n_items, LANE))          # contraction tile

    Bp = _round_up(B, tb)
    Np = _round_up(n_items, tk)

    # Zero-pad: padded batch rows are sliced off below; padded item columns
    # multiply zero W1 rows, so they add nothing to the accumulator.
    xp = x
    if (Bp, Np) != (B, n_items):
        xp = jnp.zeros((Bp, Np), x.dtype).at[:B, :n_items].set(x)
    w1p = w1
    if Np != n_items:
        w1p = jnp.zeros((Np, H), w1.dtype).at[:n_items, :].set(w1)
    xp = xp.astype(w1.dtype)           # exact for 0/1 inputs; halves HBM traffic

    grid = (Bp // tb, Np // tk)

    out = pl.pallas_call(
        encoder_kernel,
        out_shape=jax.ShapeDtypeStruct((Bp, Kp), jnp.float32),
        grid_spec=pltpu.PrefetchScalarGridSpec(
            num_scalar_prefetch=0,
            grid=grid,
            in_specs=[
                pl.BlockSpec((tb, tk), lambda i, kk: (i, kk)),   # x tile (bf16)
                pl.BlockSpec((tk, H), lambda i, kk: (kk, 0)),    # W1 tile (bf16)
                pl.BlockSpec((1, H), lambda i, kk: (0, 0)),      # b1 (f32)
                pl.BlockSpec((H, Kp), lambda i, kk: (0, 0)),     # W2' (BN folded, padded)
                pl.BlockSpec((1, Kp), lambda i, kk: (0, 0)),     # b2' (BN folded, padded)
            ],
            out_specs=pl.BlockSpec((tb, Kp), lambda i, kk: (i, 0)),
            scratch_shapes=[pltpu.VMEM((tb, H), jnp.float32)],   # x@W1 accumulator
        ),
        compiler_params=pltpu.CompilerParams(
            dimension_semantics=("parallel", "arbitrary"),
            vmem_limit_bytes=vmem_limit_bytes,
        ),
    )(xp, w1p, prep["b1"], prep["w2"], prep["b2"])

    return out[:B, :K]


def prepare_params(raw, *, w1_dtype=jnp.bfloat16):
    """One-time weight transform: fold eval-mode BatchNorm into the second
    Linear, zero-pad K to a 128-lane multiple, cast the large W1 to bf16."""
    H, K = raw["w2"].shape
    Kp = _round_up(K, LANE)

    scale = raw["gamma"] / jnp.sqrt(raw["var"] + BN_EPS)          # (H,)
    shift = raw["beta"] - raw["mean"] * scale                     # (H,)
    w2f = scale[:, None] * raw["w2"]                              # (H, K)
    b2f = shift @ raw["w2"] + raw["b2"]                           # (K,)

    w2p = jnp.zeros((H, Kp), jnp.float32).at[:, :K].set(w2f)
    b2p = jnp.zeros((1, Kp), jnp.float32).at[0, :K].set(b2f)

    return dict(
        w1=raw["w1"].astype(w1_dtype),
        b1=raw["b1"].reshape(1, H).astype(jnp.float32),
        w2=w2p,
        b2=b2p,
        k=K,
    )


def init_raw_params(key, n_items, hidden, k):
    """Deterministic synthetic parameters (PyTorch-like, Linear weights stored
    pre-transposed to [in, out]); BN stats randomized to exercise the fold."""
    k1, k2, k3, k4, k5, k6, k7, k8 = jax.random.split(key, 8)
    w1 = jax.random.normal(k1, (n_items, hidden), jnp.float32) / jnp.sqrt(n_items)
    b1 = jax.random.normal(k2, (hidden,), jnp.float32) * 0.01
    gamma = 1.0 + 0.1 * jax.random.normal(k5, (hidden,), jnp.float32)
    beta = 0.1 * jax.random.normal(k6, (hidden,), jnp.float32)
    mean = 0.1 * jax.random.normal(k7, (hidden,), jnp.float32)
    var = jax.random.uniform(k8, (hidden,), jnp.float32, 0.5, 1.5)
    w2 = jax.random.normal(k3, (hidden, k), jnp.float32) / jnp.sqrt(hidden)
    b2 = jax.random.normal(k4, (k,), jnp.float32) * 0.01
    return dict(w1=w1, b1=b1, gamma=gamma, beta=beta, mean=mean, var=var,
                w2=w2, b2=b2)


def encoder_reference(x, raw, *, w1_dtype=jnp.bfloat16):
    """Pure-JAX eval-mode reference (explicit BN math, f32).  Uses the same
    bf16 rounding of W1 that the kernel streams, so the comparison isolates
    kernel correctness rather than storage-dtype choice."""
    w1 = raw["w1"].astype(w1_dtype).astype(jnp.float32)
    h = jnp.tanh(x @ w1 + raw["b1"][None, :])
    scale = raw["gamma"] / jnp.sqrt(raw["var"] + BN_EPS)
    h = (h - raw["mean"]) * scale + raw["beta"]
    return h @ raw["w2"] + raw["b2"][None, :]


if __name__ == "__main__":
    # Encoder(k=32, n_items=256, dense_layers=[128], ...) at small scale.
    B, N_ITEMS, HIDDEN, K = 8, 256, 128, 32

    key = jax.random.PRNGKey(0)
    kx, kp = jax.random.split(key)
    # Binary implicit-feedback-style input (dense stand-in for the sparse matrix).
    x = (jax.random.uniform(kx, (B, N_ITEMS)) < 0.1).astype(jnp.float32)

    raw = init_raw_params(kp, N_ITEMS, HIDDEN, K)
    prep = prepare_params(raw)

    # tk=128 -> two contraction steps, exercising the accumulator init/finalize path.
    out = encoder_forward(x, prep, tk=128)
    out = jax.block_until_ready(out)

    ref = encoder_reference(x, raw)
    assert out.shape == (B, K), out.shape
    assert jnp.allclose(out, ref, atol=2e-3, rtol=2e-3), \
        float(jnp.max(jnp.abs(out - ref)))
    print("KERNEL_OK")
</pallas_src>

<mosaic_0001>
module attributes {stable_mosaic.version = 11 : i64} {
  func.func @encoder_kernel(%arg0: i32, %arg1: i32, %arg2: memref<8x128xbf16, #tpu.memory_space<vmem>>, %arg3: memref<128x128xbf16, #tpu.memory_space<vmem>>, %arg4: memref<1x128xf32, #tpu.memory_space<vmem>>, %arg5: memref<128x128xf32, #tpu.memory_space<vmem>>, %arg6: memref<1x128xf32, #tpu.memory_space<vmem>>, %arg7: memref<8x128xf32, #tpu.memory_space<vmem>>, %arg8: memref<8x128xf32, #tpu.memory_space<vmem>>) attributes {dimension_semantics = [#tpu.dimension_semantics<parallel>, #tpu.dimension_semantics<arbitrary>], iteration_bounds = array<i64: 1, 2>, scalar_prefetch = 0 : i64, scratch_operands = 1 : i64, tpu.core_type = #tpu.core_type<tc>, window_params = [{transform_indices = @transform_0, window_bounds = array<i64: 8, 128>}, {transform_indices = @transform_1, window_bounds = array<i64: 128, 128>}, {pipeline_mode = #tpu.pipeline_mode<synchronous>, transform_indices = @transform_2, window_bounds = array<i64: 1, 128>}, {pipeline_mode = #tpu.pipeline_mode<synchronous>, transform_indices = @transform_3, window_bounds = array<i64: 128, 128>}, {pipeline_mode = #tpu.pipeline_mode<synchronous>, transform_indices = @transform_4, window_bounds = array<i64: 1, 128>}, {transform_indices = @transform_5, window_bounds = array<i64: 8, 128>}]} {
    %c0_i32 = arith.constant 0 : i32
    %0 = arith.cmpi eq, %arg1, %c0_i32 : i32
    %1 = arith.extui %0 : i1 to i32
    %c0_i32_0 = arith.constant 0 : i32
    %2 = arith.cmpi ne, %1, %c0_i32_0 : i32
    scf.if %2 {
      %cst_9 = arith.constant 0.000000e+00 : f32
      %12 = vector.broadcast %cst_9 : f32 to vector<8x128xf32>
      %c0_10 = arith.constant 0 : index
      %c0_11 = arith.constant 0 : index
      %13 = vector.load %arg8[%c0_10, %c0_11] : memref<8x128xf32, #tpu.memory_space<vmem>>, vector<8x128xf32>
      tpu.vector_store %arg8[%c0_10, %c0_11], %12 {strides = array<i32>} : memref<8x128xf32, #tpu.memory_space<vmem>>, vector<8x128xf32>,
    } else {
    }
    %c0 = arith.constant 0 : index
    %c0_1 = arith.constant 0 : index
    %3 = vector.load %arg8[%c0, %c0_1] : memref<8x128xf32, #tpu.memory_space<vmem>>, vector<8x128xf32>
    %c0_2 = arith.constant 0 : index
    %c0_3 = arith.constant 0 : index
    %4 = vector.load %arg2[%c0_2, %c0_3] : memref<8x128xbf16, #tpu.memory_space<vmem>>, vector<8x128xbf16>
    %c0_4 = arith.constant 0 : index
    %c0_5 = arith.constant 0 : index
    %5 = vector.load %arg3[%c0_4, %c0_5] : memref<128x128xbf16, #tpu.memory_space<vmem>>, vector<128x128xbf16>
    %cst = arith.constant dense<0.000000e+00> : vector<8x128xf32>
    %6 = tpu.matmul %4, %5, %cst {dimension_numbers = #tpu.dot_dimension_numbers<[1], [0], [0], [1], [0, 0, 1, 1], [], []>} : vector<8x128xbf16>, vector<128x128xbf16>, vector<8x128xf32> -> vector<8x128xf32>
    %7 = arith.addf %3, %6 : vector<8x128xf32>
    %c0_6 = arith.constant 0 : index
    %c0_7 = arith.constant 0 : index
    %8 = vector.load %arg8[%c0_6, %c0_7] : memref<8x128xf32, #tpu.memory_space<vmem>>, vector<8x128xf32>
    tpu.vector_store %arg8[%c0_6, %c0_7], %7 {strides = array<i32>} : memref<8x128xf32, #tpu.memory_space<vmem>>, vector<8x128xf32>,
    %c1_i32 = arith.constant 1 : i32
    %9 = arith.cmpi eq, %arg1, %c1_i32 : i32
    %10 = arith.extui %9 : i1 to i32
    %c0_i32_8 = arith.constant 0 : i32
    %11 = arith.cmpi ne, %10, %c0_i32_8 : i32
    scf.if %11 {
      %c0_9 = arith.constant 0 : index
      %c0_10 = arith.constant 0 : index
      %12 = vector.load %arg8[%c0_9, %c0_10] : memref<8x128xf32, #tpu.memory_space<vmem>>, vector<8x128xf32>
      %c0_11 = arith.constant 0 : index
      %c0_12 = arith.constant 0 : index
      %13 = vector.load %arg4[%c0_11, %c0_12] : memref<1x128xf32, #tpu.memory_space<vmem>>, vector<1x128xf32>
      %14 = vector.broadcast %13 : vector<1x128xf32> to vector<8x128xf32>
      %15 = arith.addf %12, %14 : vector<8x128xf32>
      %16 = math.tanh %15 : vector<8x128xf32>
      %c0_13 = arith.constant 0 : index
      %c0_14 = arith.constant 0 : index
      %17 = vector.load %arg5[%c0_13, %c0_14] : memref<128x128xf32, #tpu.memory_space<vmem>>, vector<128x128xf32>
      %cst_15 = arith.constant dense<0.000000e+00> : vector<8x128xf32>
      %18 = tpu.matmul %16, %17, %cst_15 {dimension_numbers = #tpu.dot_dimension_numbers<[1], [0], [0], [1], [0, 0, 1, 1], [], []>} : vector<8x128xf32>, vector<128x128xf32>, vector<8x128xf32> -> vector<8x128xf32>
      %c0_16 = arith.constant 0 : index
      %c0_17 = arith.constant 0 : index
      %19 = vector.load %arg6[%c0_16, %c0_17] : memref<1x128xf32, #tpu.memory_space<vmem>>, vector<1x128xf32>
      %20 = vector.broadcast %19 : vector<1x128xf32> to vector<8x128xf32>
      %21 = arith.addf %18, %20 : vector<8x128xf32>
      %c0_18 = arith.constant 0 : index
      %c0_19 = arith.constant 0 : index
      %22 = vector.load %arg7[%c0_18, %c0_19] : memref<8x128xf32, #tpu.memory_space<vmem>>, vector<8x128xf32>
      tpu.vector_store %arg7[%c0_18, %c0_19], %21 {strides = array<i32>} : memref<8x128xf32, #tpu.memory_space<vmem>>, vector<8x128xf32>,
    } else {
    }
    return
  }
  func.func @transform_0(%arg0: i32, %arg1: i32) -> (i32, i32) {
    %c0_i32 = arith.constant 0 : i32
    return %arg0, %arg1 : i32, i32
  }
  func.func @transform_1(%arg0: i32, %arg1: i32) -> (i32, i32) {
    %c0_i32 = arith.constant 0 : i32
    %c0_i32_0 = arith.constant 0 : i32
    return %arg1, %c0_i32 : i32, i32
  }
  func.func @transform_2(%arg0: i32, %arg1: i32) -> (i32, i32) {
    %c0_i32 = arith.constant 0 : i32
    %c0_i32_0 = arith.constant 0 : i32
    %c0_i32_1 = arith.constant 0 : i32
    return %c0_i32, %c0_i32_0 : i32, i32
  }
  func.func @transform_3(%arg0: i32, %arg1: i32) -> (i32, i32) {
    %c0_i32 = arith.constant 0 : i32
    %c0_i32_0 = arith.constant 0 : i32
    %c0_i32_1 = arith.constant 0 : i32
    return %c0_i32, %c0_i32_0 : i32, i32
  }
  func.func @transform_4(%arg0: i32, %arg1: i32) -> (i32, i32) {
    %c0_i32 = arith.constant 0 : i32
    %c0_i32_0 = arith.constant 0 : i32
    %c0_i32_1 = arith.constant 0 : i32
    return %c0_i32, %c0_i32_0 : i32, i32
  }
  func.func @transform_5(%arg0: i32, %arg1: i32) -> (i32, i32) {
    %c0_i32 = arith.constant 0 : i32
    %c0_i32_0 = arith.constant 0 : i32
    return %arg0, %c0_i32 : i32, i32
  }
}

</mosaic_0001>

<bundles_post_ra>
// kernel: tpu_custom_call.1
= control target key start
LH: loop header
LB: loop body
LE: loop exit
PB: predicated region body
PF: predicated region fallthrough
CT: control target
= control target key end

     0   :  { %s1063_s0 = inlined_call_operand.hbm [shape: bf16[8,256], index: 0, kind: input, shape index: {}]   ;;  %s1064_s1 = inlined_call_operand.hbm [shape: bf16[256,128], index: 1, kind: input, shape index: {}]   ;;  %s1065_s2 = inlined_call_operand.vmem [shape: f32[1,128], index: 2, kind: input, shape index: {}]   ;;  %s1066_s3 = inlined_call_operand.hbm [shape: f32[128,128], index: 3, kind: input, shape index: {}]   ;;  %s1067_s4 = inlined_call_operand.vmem [shape: f32[1,128], index: 4, kind: input, shape index: {}]   ;;  %s1068_s5 = inlined_call_operand.hbm [shape: f32[8,128], index: 5, kind: output, shape index: {}]  }
   0x1   :  { %1069 = sst [smem:[#allocation14_spill]] %s1063_s0 }
   0x2   :  { %1070 = sst [smem:[#allocation15_spill]] %s1066_s3 }
   0x3   :  { %10 = vsyncpa [#allocation4], 0 }
   0x4   :  { %12 = vsyncpa [#allocation4 + $0x1], 0 }
   0x5   :  { %13 = vsyncpa [#allocation7], 0 }
   0x6   :  { %15 = vsyncpa [#allocation7 + $0x1], 0 }
   0x7   :  { %16 = vsyncpa [#allocation5], 0  ;;  %s920_s18 = smov 0   ;;  %s922_s19 = smov 0  }
   0x8   :  { %s924_s20 = smov 0   ;;  %s926_s21 = smov 0  }
   0x9   :  { %s928_s22 = smov 0   ;;  %s930_s23 = smov 0  }
   0xa LB: > { %s951_s24 = sadd.s32 4294967295, %s881_s23   ;;  %p555_p0 = scmp.ge.s32.totalorder %s881_s23, 1  ;;  %s881_s23 = sphi %s930_s23, %s22_s23   ;;  %s877_s22 = sphi %s928_s22, %s1081_s22   ;;  %s873_s21 = sphi %s926_s21, %s1080_s21   ;;  %s869_s20 = sphi %s924_s20, %s1079_s20   ;;  %s865_s19 = sphi %s922_s19, %s1078_s19   ;;  %s861_s18 = sphi %s920_s18, %s1077_s18  }
   0xb   : > { %p57_p1 = scmp.eq.s32.totalorder %s951_s24, 0  ;;  %p182_p2 = scmp.lt.s32.totalorder %s881_s23, 3 }
   0xc   : > { %s1071_s3 = sld [smem:[#allocation15_spill]]  ;;  %s883_s29 = smov [#allocation8]  }
   0xd   : > { %p959_p3 = pnand %p555_p0, %p182_p2  ;;  %s198_s30 = sshll.u32 %s883_s29, 4  ;;  %s199_s30 = int_to_ptr.vmem [resolvable:$true] %s198_s30 }
   0xe   : > { %s884_s6 = smov 128   ;;  %s885_s7 = smov 8  }
   0xf   : > { %p626_p4 = pneg %p959_p3  ;;  %s31_s8 = sadd.s32 1, %s877_s22 }
  0x10   : > { %p32_p6 = scmp.ge.s32.totalorder %s31_s8, 2  ;;  %s43_s9 = sadd.s32 1, %s869_s20 }
  0x11   : > { %p627_p5 = pnand %p626_p4, %p57_p1  ;;  %p50_p7 = scmp.ne.s32.totalorder %s869_s20, %s865_s19 }
  0x12   : > { %s196_s27 = sshll.u32 %s1071_s3, 4  ;;  %p51_p8 = scmp.eq.s32.totalorder %s881_s23, 0  ;;  %s197_s27 = int_to_ptr.hbm [resolvable:$true] %s196_s27 }
  0x13   : > { %629 = dma.hbm_to_vmem [thread:$0]  (!%p627_p5), %s197_s27, 2048, %s199_s30, [#allocation7], %s884_s6, %s884_s6, %s885_s7  }
  0x14   : > { %s1083_s8 = smov (%p32_p6, %s31_s8), 0  ;;  %p974_p9 = por %p51_p8, %p50_p7 }
  0x15   : > { %p56_p10 = scmp.ne.s32.totalorder %s865_s19, %s861_s18  ;;  %s39_s11 = ssub.s32 %s877_s22, %s1083_s8 }
  0x16   : > { %p638_p11 = scmp.lt.s32.totalorder %s881_s23, 2  ;;  %p41_p12 = scmp.eq.s32.totalorder %s39_s11, 0 }
  0x17   : > { %p985_p13 = por %p57_p1, %p56_p10  ;;  %s215_s13 = sand.u32 1, %s869_s20  }
  0x18   : > { %s559_s14 = sshll.u32 %s877_s22, 2  ;;  %s558_s16 = sshll.u32 %s215_s13, 2 }
  0x19   : > { %s992_s15 = scalar_select %p41_p12, %s869_s20, %s43_s9  }
  0x1a   : > { %s1075_s0 = sld [smem:[#allocation14_spill]]  ;;  %s219_s27 = scalar_lea.vmem [#allocation3], %s558_s16 }
  0x1b   : > { %s229_s29 = sshll.u32 %s219_s27, 4  ;;  %p1001_p0 = pnand %p638_p11, %p974_p9  ;;  %s230_s29 = int_to_ptr.vmem [resolvable:$true] %s229_s29 }
  0x1c   : > { %s560_s6 = sshll.u32 %s215_s13, 6  ;;  %s605_s7 = sshll.u32 %s877_s22, 6 }
  0x1d   : > { %s240_s9 = scalar_lea.vmem [#allocation6], %s560_s6  ;;  %s216_s3 = scalar_lea.sflag [#allocation4], %s215_s13 }
  0x1e   : > { %s248_s11 = sshll.u32 %s240_s9, 4  ;;  %s245_s10 = scalar_lea.hbm %s1064_s1, %s605_s7  ;;  %s249_s11 = int_to_ptr.vmem [resolvable:$true] %s248_s11 }
  0x1f   : > { %s246_s25 = sshll.u32 %s245_s10, 4  ;;  %s886_s27 = smov 64   ;;  %s247_s25 = int_to_ptr.hbm [resolvable:$true] %s246_s25 }
  0x20   : > { %s225_s26 = scalar_lea.hbm %s1075_s0, %s559_s14  ;;  %s236_s14 = sand.u32 1, %s881_s23  }
  0x21   : > { %s227_s18 = sshll.u32 %s225_s26, 4  ;;  %s237_s26 = scalar_lea.sflag [#allocation7], %s236_s14  ;;  %s228_s18 = int_to_ptr.hbm [resolvable:$true] %s227_s18 }
  0x22   : > { %633 = dma.hbm_to_vmem [thread:$0]  (!%p1001_p0), %s228_s18, 64, %s230_s29, %s216_s3  }
  0x23   : > { %s887_s0 = smov 4   ;;  %260 = sbr.rel (%p959_p3) target bundleno = 388 (0x184), region = 40 }
  0x24   : > { %636 = dma.hbm_to_vmem [thread:$0]  (!%p1001_p0), %s247_s25, 1024, %s249_s11, %s237_s26, %s886_s27, %s886_s27, %s887_s0  }
  0x25   : > { %s262_s13 = sand.u32 (!%p959_p3), 1, %s865_s19  }
  0x26   : > { %s564_s3 = sshll.u32 (!%p959_p3), %s262_s13, 2  ;;  %s263_s18 = scalar_lea.sflag (!%p959_p3), [#allocation4], %s262_s13 }
  0x27   : > { %s1017_s29 = scalar_lea.vmem (!%p959_p3), [#allocation3], %s564_s3 }
  0x28   : > { %844 = dma.done.wait (%p985_p13), %s263_s18, 64  }
  0x29   : > { %846 = vsyncadd (%p985_p13), %s263_s18, 4294967232  ;;  %s272_s6 = sand.u32 1, %s951_s24   ;;  %s565_s30 = sshll.u32 %s262_s13, 6 }
  0x2a   : > { %s273_s0 = scalar_lea.sflag [#allocation7], %s272_s6  ;;  %s276_s7 = scalar_lea.vmem [#allocation6], %s565_s30 }
  0x2b   : > { %848 = dma.done.wait (%p985_p13), %s273_s0, 1024  }
  0x2c   : > { %850 = vsyncadd (%p985_p13), %s273_s0, 4294966272 }
  0x2d   : > { %852 = dma.done.wait (%p57_p1), [#allocation7], 2048  }
  0x2e   : > { %854 = vsyncadd (%p57_p1), [#allocation7], 4294965248  ;;  %p567_p2 = scmp.ne.s32.totalorder %s873_s21, 0 }
  0x30   : > { %313 = sbr.rel (%p567_p2) target bundleno = 55 (0x37), region = 56 }
  0x35   : > { %v888_v0 = vmov 0.0  }
  0x36   : > { %314 = vst [vmem:[#allocation2] sm:$0xff] %v888_v0 }
  0x37 PF: > { %v613_v1 = vld [vmem:[%s276_s7 + $0x38] sm:$0xff]  ;;  %v612_v2 = vld [vmem:[%s276_s7 + $0x30] sm:$0xff]  ;;  %v611_v3 = vld [vmem:[%s276_s7 + $0x28] sm:$0xff]  ;;  %p600_p1 = scmp.ne.s32.totalorder %s873_s21, 1 }
  0x38   : > { %381 = vmatpush.bf16.msra.mxu0 %v613_v1  ;;  %v610_v4 = vld [vmem:[%s276_s7 + $0x20] sm:$0xff]  ;;  %v609_v5 = vld [vmem:[%s276_s7 + $0x18] sm:$0xff]  ;;  %v608_v6 = vld [vmem:[%s276_s7 + $0x10] sm:$0xff] }
  0x39   : > { %v607_v7 = vld [vmem:[%s276_s7 + $0x8] sm:$0xff]  ;;  %v606_v8 = vld [vmem:[%s276_s7] sm:$0xff]  ;;  %v316_v9 = vld [vmem:[%s1017_s29] sm:$0xf] }
  0x3c   : > { %382 = vmatpush.bf16.msra.mxu0 %v612_v2 }
  0x3d   : > { %v315_v10 = vld [vmem:[#allocation2] sm:$0xff] }
  0x40   : > { %383 = vmatpush.bf16.msra.mxu0 %v611_v3 }
  0x44   : > { %384 = vmatpush.bf16.msra.mxu0 %v610_v4 }
  0x48   : > { %385 = vmatpush.bf16.msra.mxu0 %v609_v5 }
  0x4c   : > { %386 = vmatpush.bf16.msra.mxu0 %v608_v6 }
  0x50   : > { %387 = vmatpush.bf16.msra.mxu0 %v607_v7 }
  0x54   : > { %388 = vmatpush.bf16.msra.mxu0 %v606_v8 }
  0x57   : > { %389 = vmatmul.bf16.vlgmr.msra.gmra.mxu0 %v316_v9 }
  0xd4   : > { %v390_v11 = vpop.f32.mrf.mxu0 }
  0xd5   : > { %v394_v12 = vadd.f32 %v390_v11, %v315_v10 }
  0xd7   : > { %395 = vst [vmem:[#allocation2] sm:$0xff] %v394_v12 }
  0xd8   : > { %399 = sbr.rel (%p600_p1) target bundleno = 382 (0x17e), region = 60 }
  0xdc   : > { %v392_v13 = vpop.f32.mrf.mxu0 }
  0xdd   : > { %v422_v14 = vld [vmem:[#allocation8 + $0x78] sm:$0xff]  ;;  %v421_v15 = vld [vmem:[#allocation8 + $0x70] sm:$0xff]  ;;  %v420_v16 = vld [vmem:[#allocation8 + $0x68] sm:$0xff] }
  0xde   : > { %427 = vmatpush.msra.mxu0 %v422_v14  ;;  %v419_v17 = vld [vmem:[#allocation8 + $0x60] sm:$0xff]  ;;  %v418_v18 = vld [vmem:[#allocation8 + $0x58] sm:$0xff]  ;;  %v417_v19 = vld [vmem:[#allocation8 + $0x50] sm:$0xff] }
  0xdf   : > { %v416_v20 = vld [vmem:[#allocation8 + $0x48] sm:$0xff]  ;;  %v415_v21 = vld [vmem:[#allocation8 + $0x40] sm:$0xff]  ;;  %v414_v22 = vld [vmem:[#allocation8 + $0x38] sm:$0xff] }
  0xe0   : > { %428 = vmatpush.msra.mxu0 %v421_v15  ;;  %v697_v23 = vld [vmem:[%s1065_s2] ss:$0 sm:$0xff]  ;;  %v412_v26 = vld [vmem:[#allocation8 + $0x28] sm:$0xff]  ;;  %v411_v28 = vld [vmem:[#allocation8 + $0x20] sm:$0xff] }
  0xe1   : > { %v413_v24 = vld [vmem:[#allocation8 + $0x30] sm:$0xff]  ;;  %v410_v29 = vld [vmem:[#allocation8 + $0x18] sm:$0xff]  ;;  %v408_v31 = vld [vmem:[#allocation8 + $0x8] sm:$0xff] }
  0xe2   : > { %429 = vmatpush.msra.mxu0 %v420_v16  ;;  %v400_v25 = vld [vmem:[#allocation2] sm:$0xff]  ;;  %v407_v32 = vld [vmem:[#allocation8] sm:$0xff] }
  0xe3   : > { %v405_v27 = vadd.f32 %v697_v23, %v400_v25  ;;  %v409_v30 = vld [vmem:[#allocation8 + $0x10] sm:$0xff] }
  0xe4   : > { %430 = vmatpush.msra.mxu0 %v419_v17  ;;  %v698_v34 = vld [vmem:[%s1067_s4] ss:$0 sm:$0xff] }
  0xe5   : > { %699 = vtanh.f32 %v405_v27 }
  0xe6   : > { %431 = vmatpush.msra.mxu0 %v418_v18 }
  0xe8   : > { %432 = vmatpush.msra.mxu0 %v417_v19 }
  0xea   : > { %433 = vmatpush.msra.mxu0 %v416_v20 }
  0xeb   : > { %v700_v33 = vpop.eup %699 }
  0xec   : > { %434 = vmatpush.msra.mxu0 %v415_v21 }
  0xee   : > { %435 = vmatpush.msra.mxu0 %v414_v22 }
  0xf0   : > { %436 = vmatpush.msra.mxu0 %v413_v24 }
  0xf2   : > { %437 = vmatpush.msra.mxu0 %v412_v26 }
  0xf4   : > { %438 = vmatpush.msra.mxu0 %v411_v28 }
  0xf6   : > { %439 = vmatpush.msra.mxu0 %v410_v29 }
  0xf8   : > { %440 = vmatpush.msra.mxu0 %v409_v30 }
  0xfa   : > { %441 = vmatpush.msra.mxu0 %v408_v31 }
  0xfc   : > { %442 = vmatpush.msra.mxu0 %v407_v32 }
  0xfd   : > { %443 = vmatmul.f32.vlgmr.msra.gmra.mxu0 %v700_v33 }
 0x17a   : > { %v444_v35 = vpop.f32.mrf.mxu0 }
 0x17b   : > { %v445_v36 = vadd.f32 %v698_v34, %v444_v35 }
 0x17d   : > { %447 = vst [vmem:[#allocation9] sm:$0xff] %v445_v36 }
 0x17e PF: > { %p640_p3 = scmp.eq.s32.totalorder %s951_s24, 1  ;;  %s458_s16 = sshll.u32 %s1068_s5, 4  ;;  %s459_s16 = int_to_ptr.hbm [resolvable:$true] %s458_s16 }
 0x17f   : > { %s889_s17 = smov [#allocation9]  }
 0x180   : > { %s456_s10 = sshll.u32 %s889_s17, 4  ;;  %s457_s10 = int_to_ptr.vmem [resolvable:$true] %s456_s10 }
 0x181   : > { %623 = dma.vmem_to_hbm [thread:$0]  (%p640_p3), %s457_s10, 128, %s459_s16, [#allocation5]  }
 0x182   : > { %856 = dma.done.wait (%p640_p3), [#allocation5], 128  }
 0x183   : > { %858 = vsyncadd (%p640_p3), [#allocation5], 4294967168 }
 0x184 PF: > { %s22_s23 = sadd.s32 1, %s881_s23   ;;  %s1077_s18 = smov %s865_s19 }
 0x185   : > { %p19_p4 = scmp.ge.s32.totalorder %s22_s23, 4   ;;  %s1078_s19 = smov %s869_s20 }
 0x186   : > { %s1079_s20 = smov %s992_s15  ;;  %s1080_s21 = smov %s877_s22 }
 0x187   : > { %s1081_s22 = smov %s1083_s8  ;;  %21 = sbr.rel (!%p19_p4) target bundleno = 10 (0xa), region = 103 }
 0x18c   :  { %472 = vsyncpa [#allocation4], 1 }
 0x18d   :  { %474 = vsyncpa [#allocation4 + $0x1], 1 }
 0x18e   :  { %475 = vsyncpa [#allocation7], 1 }
 0x18f   :  { %477 = vsyncpa [#allocation7 + $0x1], 1 }
 0x190   :  { %478 = vsyncpa [#allocation5], 1 }
 0x191   :  { %480 = vsyncpa [#allocation5 + $0x1], 1 }

</bundles_post_ra>
